<compile_context>
chip_gen: v7x
topology: tpu7x:2x2x1
jax: 0.10.0
libtpu: 0.0.40
codegen_flags: <defaults>
</compile_context>

<pallas_src>
import math

import jax
import jax.numpy as jnp
from jax.experimental import pallas as pl
from jax.experimental.pallas import tpu as pltpu

LANES = 128      # vreg lane width
SUBLANES = 8     # vreg sublane count (f32)
ROW_TILE = 512   # rows of 128 lanes per grid step: 512*128*4B = 256 KiB/tile

C1 = 36000000000000.0  # literal constant from the PyTorch forward

PARAM_ORDER = ('q1', 'q2', 's1', 't1', 'b1',
               'q3', 'q4', 's2', 't2', 'b2',
               'q5', 't3', 'b3')


def _rup(x, m):
    return (x + m - 1) // m * m


# ----------------------------- Pallas kernel -----------------------------

def _ratio_critic_kernel(p_ref, x_ref, o_ref):
    # p_ref: SMEM (13,) f32 -> [q1,q2,s1,t1,b1, q3,q4,s2,t2,b2, q5,t3,b3]
    # x_ref: VMEM (TM, 128) f32 tile of the flattened input
    # o_ref: VMEM (3, TM, 128) f32 -> stacked [h1, h2, h3]
    x = x_ref[...]

    q1, q2, s1, t1, b1 = p_ref[0], p_ref[1], p_ref[2], p_ref[3], p_ref[4]
    q3, q4, s2, t2, b2 = p_ref[5], p_ref[6], p_ref[7], p_ref[8], p_ref[9]
    q5, t3, b3 = p_ref[10], p_ref[11], p_ref[12]

    d1 = x - q1
    h1 = C1 * d1 * d1 * s1 + (x - q2) * t1 + b1
    d2 = x - q3
    h2 = d2 * d2 * s2 + (x - q4) * t2 + b2
    h3 = t3 * (x - q5) + b3

    o_ref[0] = h1
    o_ref[1] = h2
    o_ref[2] = h3


# ----------------------------- wrapper -----------------------------

def prepare_params(params):
    """Pack the 13 (1,1) parameters into one SMEM-friendly f32 vector (done once)."""
    return jnp.stack(
        [jnp.asarray(params[k], jnp.float32).reshape(()) for k in PARAM_ORDER])


@jax.jit
def ratio_critic_forward(x, pvec):
    """Pallas forward: returns cat([h1, h2, h3], axis=-1) with h_i.shape == x.shape."""
    x = x.astype(jnp.float32)
    in_shape = x.shape
    m = math.prod(in_shape)

    rows = _rup(pl.cdiv(m, LANES), SUBLANES)
    tm = min(ROW_TILE, rows)
    rows_p = _rup(rows, tm)

    flat = jnp.pad(x.reshape(-1), (0, rows_p * LANES - m)).reshape(rows_p, LANES)

    out = pl.pallas_call(
        _ratio_critic_kernel,
        grid=(rows_p // tm,),
        in_specs=[
            # 13 scalar params, untiled, resident in SMEM for the whole call.
            pl.BlockSpec(memory_space=pltpu.MemorySpace.SMEM),
            # lane-dense row tiles of the flattened input
            pl.BlockSpec((tm, LANES), lambda i: (i, 0)),
        ],
        out_specs=pl.BlockSpec((3, tm, LANES), lambda i: (0, i, 0)),
        out_shape=jax.ShapeDtypeStruct((3, rows_p, LANES), jnp.float32),
        compiler_params=pltpu.CompilerParams(
            dimension_semantics=("parallel",)),
    )(pvec, flat)

    h = out.reshape(3, rows_p * LANES)[:, :m].reshape((3,) + in_shape)
    # torch.cat([h1, h2, h3], dim=-1)
    return jnp.concatenate([h[0], h[1], h[2]], axis=-1)


# ----------------------------- reference & init -----------------------------

def reference_forward(x, params):
    """Pure-jnp reference mirroring the PyTorch forward exactly."""
    x = x.astype(jnp.float32)
    p = params
    h1 = C1 * (x - p['q1']) * (x - p['q1']) * p['s1'] + (x - p['q2']) * p['t1'] + p['b1']
    h2 = (x - p['q3']) * (x - p['q3']) * p['s2'] + (x - p['q4']) * p['t2'] + p['b2']
    h3 = p['t3'] * (x - p['q5']) + p['b3']
    return jnp.concatenate([h1, h2, h3], axis=-1)


def init_params(key):
    # nn.init.xavier_uniform_ on a (1,1) tensor: U(-sqrt(3), sqrt(3))
    bound = math.sqrt(3.0)
    keys = jax.random.split(key, len(PARAM_ORDER))
    return {n: jax.random.uniform(k, (1, 1), jnp.float32, -bound, bound)
            for n, k in zip(PARAM_ORDER, keys)}


if __name__ == "__main__":
    key = jax.random.PRNGKey(0)
    pkey, xkey = jax.random.split(key)

    params = init_params(pkey)
    pvec = prepare_params(params)          # packed once, reused every forward

    # "1D" critic: dim_input = 1 -> x is (batch, 1); logits are (batch, 3).
    x = jax.random.normal(xkey, (8, 1), jnp.float32)

    out = jax.block_until_ready(ratio_critic_forward(x, pvec))
    assert out.shape == (8, 3), out.shape
    assert bool(jnp.all(jnp.isfinite(out)))

    ref = reference_forward(x, params)
    # h1 carries a 3.6e13 scale factor -> compare with relative tolerance.
    assert bool(jnp.allclose(out, ref, rtol=1e-5, atol=1e-4)), (out, ref)

    print("KERNEL_OK")
</pallas_src>

<mosaic_0001>
module attributes {stable_mosaic.version = 11 : i64} {
  func.func @_ratio_critic_kernel(%arg0: i32, %arg1: memref<13xf32, #tpu.memory_space<smem>>, %arg2: memref<8x128xf32, #tpu.memory_space<vmem>>, %arg3: memref<3x8x128xf32, #tpu.memory_space<vmem>>) attributes {dimension_semantics = [#tpu.dimension_semantics<parallel>], iteration_bounds = array<i64: 1>, scalar_prefetch = 0 : i64, scratch_operands = 0 : i64, tpu.core_type = #tpu.core_type<tc>, window_params = [{transform_indices = @transform_0, window_bounds = array<i64: 13>}, {transform_indices = @transform_1, window_bounds = array<i64: 8, 128>}, {transform_indices = @transform_2, window_bounds = array<i64: 3, 8, 128>}]} {
    %c0 = arith.constant 0 : index
    %c0_0 = arith.constant 0 : index
    %0 = vector.load %arg2[%c0, %c0_0] : memref<8x128xf32, #tpu.memory_space<vmem>>, vector<8x128xf32>
    %c0_1 = arith.constant 0 : index
    %1 = memref.load %arg1[%c0_1] : memref<13xf32, #tpu.memory_space<smem>>
    %c1 = arith.constant 1 : index
    %2 = memref.load %arg1[%c1] : memref<13xf32, #tpu.memory_space<smem>>
    %c2 = arith.constant 2 : index
    %3 = memref.load %arg1[%c2] : memref<13xf32, #tpu.memory_space<smem>>
    %c3 = arith.constant 3 : index
    %4 = memref.load %arg1[%c3] : memref<13xf32, #tpu.memory_space<smem>>
    %c4 = arith.constant 4 : index
    %5 = memref.load %arg1[%c4] : memref<13xf32, #tpu.memory_space<smem>>
    %c5 = arith.constant 5 : index
    %6 = memref.load %arg1[%c5] : memref<13xf32, #tpu.memory_space<smem>>
    %c6 = arith.constant 6 : index
    %7 = memref.load %arg1[%c6] : memref<13xf32, #tpu.memory_space<smem>>
    %c7 = arith.constant 7 : index
    %8 = memref.load %arg1[%c7] : memref<13xf32, #tpu.memory_space<smem>>
    %c8 = arith.constant 8 : index
    %9 = memref.load %arg1[%c8] : memref<13xf32, #tpu.memory_space<smem>>
    %c9 = arith.constant 9 : index
    %10 = memref.load %arg1[%c9] : memref<13xf32, #tpu.memory_space<smem>>
    %c10 = arith.constant 10 : index
    %11 = memref.load %arg1[%c10] : memref<13xf32, #tpu.memory_space<smem>>
    %c11 = arith.constant 11 : index
    %12 = memref.load %arg1[%c11] : memref<13xf32, #tpu.memory_space<smem>>
    %c12 = arith.constant 12 : index
    %13 = memref.load %arg1[%c12] : memref<13xf32, #tpu.memory_space<smem>>
    %14 = vector.broadcast %1 : f32 to vector<8x128xf32>
    %15 = arith.subf %0, %14 : vector<8x128xf32>
    %cst = arith.constant 3.600000e+13 : f32
    %16 = vector.broadcast %cst : f32 to vector<8x128xf32>
    %17 = arith.mulf %16, %15 : vector<8x128xf32>
    %18 = arith.mulf %17, %15 : vector<8x128xf32>
    %19 = vector.broadcast %3 : f32 to vector<8x128xf32>
    %20 = arith.mulf %18, %19 : vector<8x128xf32>
    %21 = vector.broadcast %2 : f32 to vector<8x128xf32>
    %22 = arith.subf %0, %21 : vector<8x128xf32>
    %23 = vector.broadcast %4 : f32 to vector<8x128xf32>
    %24 = arith.mulf %22, %23 : vector<8x128xf32>
    %25 = arith.addf %20, %24 : vector<8x128xf32>
    %26 = vector.broadcast %5 : f32 to vector<8x128xf32>
    %27 = arith.addf %25, %26 : vector<8x128xf32>
    %28 = vector.broadcast %6 : f32 to vector<8x128xf32>
    %29 = arith.subf %0, %28 : vector<8x128xf32>
    %30 = arith.mulf %29, %29 : vector<8x128xf32>
    %31 = vector.broadcast %8 : f32 to vector<8x128xf32>
    %32 = arith.mulf %30, %31 : vector<8x128xf32>
    %33 = vector.broadcast %7 : f32 to vector<8x128xf32>
    %34 = arith.subf %0, %33 : vector<8x128xf32>
    %35 = vector.broadcast %9 : f32 to vector<8x128xf32>
    %36 = arith.mulf %34, %35 : vector<8x128xf32>
    %37 = arith.addf %32, %36 : vector<8x128xf32>
    %38 = vector.broadcast %10 : f32 to vector<8x128xf32>
    %39 = arith.addf %37, %38 : vector<8x128xf32>
    %40 = vector.broadcast %11 : f32 to vector<8x128xf32>
    %41 = arith.subf %0, %40 : vector<8x128xf32>
    %42 = vector.broadcast %12 : f32 to vector<8x128xf32>
    %43 = arith.mulf %42, %41 : vector<8x128xf32>
    %44 = vector.broadcast %13 : f32 to vector<8x128xf32>
    %45 = arith.addf %43, %44 : vector<8x128xf32>
    %c0_2 = arith.constant 0 : index
    %c0_3 = arith.constant 0 : index
    %c0_4 = arith.constant 0 : index
    %46 = vector.load %arg3[%c0_2, %c0_3, %c0_4] : memref<3x8x128xf32, #tpu.memory_space<vmem>>, vector<1x8x128xf32>
    %47 = vector.shape_cast %46 : vector<1x8x128xf32> to vector<8x128xf32>
    %48 = vector.shape_cast %27 : vector<8x128xf32> to vector<1x8x128xf32>
    tpu.vector_store %arg3[%c0_2, %c0_3, %c0_4], %48 {strides = array<i32>} : memref<3x8x128xf32, #tpu.memory_space<vmem>>, vector<1x8x128xf32>,
    %c1_5 = arith.constant 1 : index
    %c0_6 = arith.constant 0 : index
    %c0_7 = arith.constant 0 : index
    %49 = vector.load %arg3[%c1_5, %c0_6, %c0_7] : memref<3x8x128xf32, #tpu.memory_space<vmem>>, vector<1x8x128xf32>
    %50 = vector.shape_cast %49 : vector<1x8x128xf32> to vector<8x128xf32>
    %51 = vector.shape_cast %39 : vector<8x128xf32> to vector<1x8x128xf32>
    tpu.vector_store %arg3[%c1_5, %c0_6, %c0_7], %51 {strides = array<i32>} : memref<3x8x128xf32, #tpu.memory_space<vmem>>, vector<1x8x128xf32>,
    %c2_8 = arith.constant 2 : index
    %c0_9 = arith.constant 0 : index
    %c0_10 = arith.constant 0 : index
    %52 = vector.load %arg3[%c2_8, %c0_9, %c0_10] : memref<3x8x128xf32, #tpu.memory_space<vmem>>, vector<1x8x128xf32>
    %53 = vector.shape_cast %52 : vector<1x8x128xf32> to vector<8x128xf32>
    %54 = vector.shape_cast %45 : vector<8x128xf32> to vector<1x8x128xf32>
    tpu.vector_store %arg3[%c2_8, %c0_9, %c0_10], %54 {strides = array<i32>} : memref<3x8x128xf32, #tpu.memory_space<vmem>>, vector<1x8x128xf32>,
    return
  }
  func.func @transform_0(%arg0: i32) -> i32 {
    %c0_i32 = arith.constant 0 : i32
    %c0_i32_0 = arith.constant 0 : i32
    return %c0_i32 : i32
  }
  func.func @transform_1(%arg0: i32) -> (i32, i32) {
    %c0_i32 = arith.constant 0 : i32
    %c0_i32_0 = arith.constant 0 : i32
    return %arg0, %c0_i32 : i32, i32
  }
  func.func @transform_2(%arg0: i32) -> (i32, i32, i32) {
    %c0_i32 = arith.constant 0 : i32
    %c0_i32_0 = arith.constant 0 : i32
    %c0_i32_1 = arith.constant 0 : i32
    return %c0_i32, %arg0, %c0_i32_0 : i32, i32, i32
  }
}

</mosaic_0001>

<bundles_post_ra>
// kernel: ratio_critic_forward.1
= control target key start
LH: loop header
LB: loop body
LE: loop exit
PB: predicated region body
PF: predicated region fallthrough
CT: control target
= control target key end

     0   :  { %7 = vsyncpa [#allocation3], 0  ;;  %s145_s0 = inlined_call_operand.vmem [shape: f32[13], index: 0, kind: input, shape index: {}]   ;;  %s146_s1 = inlined_call_operand.vmem [shape: f32[8,128], index: 1, kind: input, shape index: {}]   ;;  %s147_s2 = inlined_call_operand.vmem [shape: f32[3,8,128], index: 2, kind: output, shape index: {}]  }
   0x1   :  { %s14_s11 = sshll.u32 %s145_s0, 4  ;;  %s15_s11 = int_to_ptr.vmem [resolvable:$true] %s14_s11 }
   0x2   :  { %s94_s12 = scalar_lea.vmem %s15_s11, 16  ;;  %p99_p1 = scmp.lt.s32.totalorder %s15_s11, %s15_s11 }
   0x3   :  { %p95_p0 = scmp.ne.s32.totalorder %s15_s11, %s94_s12  ;;  %p100_p2 = scmp.lt.s32.totalorder %s94_s12, %s94_s12 }
   0x5   :  { %p101_p3 = por %p100_p2, %p99_p1 }
   0x7   :  { %p102_p4 = pnand %p101_p3, %p95_p0 }
   0x9   :  { %105 = shalt.err (!%p102_p4)
}
   0xa   :  { %s108_s13 = smov [#allocation2]  }
   0xb   :  { %17 = dma.vmem_to_smem %s15_s11, 16, %s108_s13, [#allocation3]  }
   0xc   :  { %106 = dma.done.wait [#allocation3], 16  }
   0xd   :  { %107 = vsyncadd [#allocation3], 4294967280 }
   0xe   :  { %23 = sfence }
   0xf   :  { %s25_s14 = sld [smem:[#allocation2]]  ;;  %s79_s15 = sld [smem:[#allocation2 + $0x1]]  ;;  %v24_v0 = vld [vmem:[%s146_s1] sm:$0xff] }
  0x10   :  { %s127_s16 = sld [smem:[#allocation2 + $0x2]]  ;;  %s81_s17 = sld [smem:[#allocation2 + $0x3]] }
  0x11   :  { %s83_s18 = sld [smem:[#allocation2 + $0x5]]  ;;  %s84_s0 = sld [smem:[#allocation2 + $0x6]] }
  0x12   :  { %s85_s19 = sld [smem:[#allocation2 + $0x7]]  ;;  %s132_s22 = sld [smem:[#allocation2 + $0x4]] }
  0x13   :  { %s86_s23 = sld [smem:[#allocation2 + $0x8]]  ;;  %s88_s24 = sld [smem:[#allocation2 + $0xa]] }
  0x14   :  { %s89_s25 = sld [smem:[#allocation2 + $0xb]]  ;;  %s87_s26 = sld [smem:[#allocation2 + $0x9]] }
  0x15   :  { %v38_v1 = vstv %s25_s14  ;;  %v44_v2 = vstv %s79_s15  ;;  %s90_s27 = sld [smem:[#allocation2 + $0xc]] }
  0x16   :  { %v39_v3 = vsub.f32 %v24_v0, %v38_v1  ;;  %v45_v4 = vsub.f32 %v24_v0, %v44_v2  ;;  %v46_v5 = vstv %s81_s17  ;;  %v42_v8 = vstv %s127_s16 }
  0x17   :  { %v51_v6 = vstv %s83_s18  ;;  %v56_v12 = vstv %s84_s0 }
  0x18   :  { %v40_v7 = vmul.f32 3.6e+13, %v39_v3  ;;  %v52_v9 = vsub.f32 %v24_v0, %v51_v6  ;;  %v47_v10 = vmul.f32 %v46_v5, %v45_v4  ;;  %v54_v11 = vstv %s85_s19 }
  0x19   :  { %v58_v13 = vstv %s86_s23  ;;  %v57_v16 = vsub.f32 %v24_v0, %v56_v12  ;;  %v63_v17 = vstv %s88_s24  ;;  %v49_v24 = vstv %s132_s22 }
  0x1a   :  { %v41_v14 = vmul.f32 %v40_v7, %v39_v3  ;;  %v53_v15 = vmul.f32 %v52_v9, %v52_v9  ;;  %v64_v18 = vsub.f32 %v24_v0, %v63_v17  ;;  %v65_v19 = vstv %s89_s25 }
  0x1b   :  { %v59_v22 = vmul.f32 %v58_v13, %v57_v16  ;;  %v67_v23 = vstv %s90_s27  ;;  %v61_v25 = vstv %s87_s26 }
  0x1c   :  { %v43_v20 = vmul.f32 %v42_v8, %v41_v14  ;;  %v55_v21 = vmul.f32 %v54_v11, %v53_v15  ;;  %v66_v26 = vmul.f32 %v65_v19, %v64_v18 }
  0x1e   :  { %v48_v27 = vadd.f32 %v47_v10, %v43_v20  ;;  %v60_v28 = vadd.f32 %v59_v22, %v55_v21  ;;  %v68_v29 = vadd.f32 %v67_v23, %v66_v26 }
  0x20   :  { %v50_v30 = vadd.f32 %v49_v24, %v48_v27  ;;  %v62_v31 = vadd.f32 %v61_v25, %v60_v28  ;;  %92 = vst [vmem:[%s147_s2 + $0x10] sm:$0xff] %v68_v29 }
  0x22   :  { %69 = vst [vmem:[%s147_s2] sm:$0xff] %v50_v30  ;;  %91 = vst [vmem:[%s147_s2 + $0x8] sm:$0xff] %v62_v31 }
  0x23   :  { %78 = vsyncpa [#allocation3], 1 }

</bundles_post_ra>
